<compile_context>
chip_gen: v7x
topology: tpu7x:2x2x1
jax: 0.10.0
libtpu: 0.0.40
codegen_flags: <defaults>
</compile_context>

<pallas_src>
import math
from functools import partial

import jax
import jax.numpy as jnp
from jax.experimental import pallas as pl
from jax.experimental.pallas import tpu as pltpu


# ----------------------------------------------------------------------------- params


def init_vae_params(key, vect_length, num_layer, code_length):
    """Deterministic parameter init mirroring the PyTorch module's layer shapes."""
    ds = (vect_length / code_length) ** (1.0 / num_layer)

    # encoder Linear dims (same int() arithmetic as the PyTorch __init__)
    enc_dims = [
        (int(vect_length // ds**i), int(vect_length // ds ** (i + 1)))
        for i in range(num_layer - 1)
    ]
    enc_out = int(vect_length // ds ** (num_layer - 1))

    # decoder Linear dims
    dec_dims = [
        (int(code_length * ds**i), int(code_length * ds ** (i + 1)))
        for i in range(num_layer - 1)
    ]
    dec_dims.append((int(code_length * ds ** (num_layer - 1)), vect_length))

    def linear(k, fan_in, fan_out):
        k1, k2 = jax.random.split(k)
        bound = 1.0 / math.sqrt(fan_in)  # PyTorch nn.Linear default uniform bound
        w = jax.random.uniform(k1, (fan_in, fan_out), jnp.float32, -bound, bound)
        b = jax.random.uniform(k2, (1, fan_out), jnp.float32, -bound, bound)
        return w, b

    n_keys = len(enc_dims) + len(dec_dims) + 3
    keys = list(jax.random.split(key, n_keys))
    ki = 0
    params = {"enc": [], "dec": []}
    for fi, fo in enc_dims:
        params["enc"].append(linear(keys[ki], fi, fo)); ki += 1
    params["tomean"] = linear(keys[ki], enc_out * 3, code_length); ki += 1
    params["tosigma"] = linear(keys[ki], enc_out * 3, code_length); ki += 1
    params["dec_all"] = linear(keys[ki], code_length, code_length * 3); ki += 1
    for fi, fo in dec_dims:
        params["dec"].append(linear(keys[ki], fi, fo)); ki += 1
    return params, enc_out


# ----------------------------------------------------------------------------- kernel


def make_vae_kernel(n_enc, n_dec, code_length, batch):
    """Build the VAE forward kernel for a fixed layer count / batch (traced once)."""
    C = code_length
    B = batch

    def kernel(x_ref, eps_ref, *refs):
        # ---- unpack parameter refs (flat list) + output refs -------------------
        idx = 0
        enc_wb = []
        for _ in range(n_enc):
            enc_wb.append((refs[idx], refs[idx + 1])); idx += 2
        w_head_ref, b_head_ref = refs[idx], refs[idx + 1]; idx += 2      # (3,enc_out,2C),(1,2C)
        wda_ref, bda_ref = refs[idx], refs[idx + 1]; idx += 2            # (3,C,C),(3,1,C)
        dec_wb = []
        for _ in range(n_dec):
            dec_wb.append((refs[idx], refs[idx + 1])); idx += 2
        recon_ref, ml_ref = refs[idx], refs[idx + 1]

        # ---- shared encoder applied once on the (3B, V) coordinate stack -------
        h = x_ref[...]                                                   # (3B, V)
        for w_r, b_r in enc_wb:
            h = jnp.maximum(
                jnp.dot(h, w_r[...], preferred_element_type=jnp.float32) + b_r[...],
                0.0)
        # h: (3B, enc_out); rows [cB:(c+1)B] hold the code of coordinate c.

        # ---- fused mean/log_sigma heads: sum of per-coordinate block matmuls ---
        ml = b_head_ref[...]                                             # (1, 2C)
        for c in range(3):
            ml = ml + jnp.dot(h[c * B:(c + 1) * B, :], w_head_ref[c],
                              preferred_element_type=jnp.float32)        # (B, 2C)
        mean = ml[:, :C]
        log_std = ml[:, C:]

        # ---- reparametrize: z = mean + eps * exp(log_sigma) --------------------
        z = mean + eps_ref[...] * jnp.exp(log_std)                       # (B, C)

        # ---- decoder_all, per-coord blocks stacked sublane-wise → (3B, C) ------
        d_parts = []
        for c in range(3):
            d_parts.append(jnp.maximum(
                jnp.dot(z, wda_ref[c], preferred_element_type=jnp.float32)
                + bda_ref[c], 0.0))
        hd = jnp.concatenate(d_parts, axis=0)                            # (3B, C)

        # ---- shared decoder applied once on the stacked activations ------------
        for li, (w_r, b_r) in enumerate(dec_wb):
            hd = jnp.dot(hd, w_r[...], preferred_element_type=jnp.float32) + b_r[...]
            if li < n_dec - 1:                # final decoder Linear has no ReLU
                hd = jnp.maximum(hd, 0.0)

        recon_ref[...] = hd                   # single lane-dense (3B, V) store
        ml_ref[...] = ml                      # (B, 2C): [mean | log_std]

    return kernel


# ----------------------------------------------------------------------------- wrapper


@partial(jax.jit, static_argnums=(3, 4))
def vae_forward(x, eps, params, code_length, enc_out):
    n_enc = len(params["enc"])
    n_dec = len(params["dec"])
    B, _, V = x.shape
    C = code_length

    # ---- wrapper-side layout plumbing (free for the kernel) --------------------
    # coordinate-major stack of the input: (B, 3, V) -> (3B, V)
    x_stk = jnp.transpose(x, (1, 0, 2)).reshape(3 * B, V)

    # fuse mean/sigma heads along the output axis, split per coordinate block
    wm, bm = params["tomean"]
    ws, bs = params["tosigma"]
    w_head = jnp.concatenate([wm, ws], axis=1).reshape(3, enc_out, 2 * C)  # (3,enc_out,2C)
    b_head = jnp.concatenate([bm, bs], axis=1)                             # (1, 2C)

    # split decoder_all into per-coordinate (C, C) blocks
    wda, bda = params["dec_all"]
    wda_s = wda.reshape(C, 3, C).transpose(1, 0, 2)                        # (3, C, C)
    bda_s = bda.reshape(3, 1, C)                                           # (3, 1, C)

    flat = []
    for w, b in params["enc"]:
        flat += [w, b]
    flat += [w_head, b_head, wda_s, bda_s]
    for w, b in params["dec"]:
        flat += [w, b]

    kernel = make_vae_kernel(n_enc, n_dec, C, B)

    vmem = pl.BlockSpec(memory_space=pltpu.MemorySpace.VMEM)  # full-array VMEM, no grid
    out_shapes = (
        jax.ShapeDtypeStruct((3 * B, V), jnp.float32),   # recon, coordinate-major stack
        jax.ShapeDtypeStruct((B, 2 * C), jnp.float32),   # [mean | log_std]
    )
    recon_stk, ml = pl.pallas_call(
        kernel,
        out_shape=out_shapes,
        in_specs=[vmem] * (2 + len(flat)),
        out_specs=(vmem, vmem),
    )(x_stk, eps, *flat)

    recon = jnp.transpose(recon_stk.reshape(3, B, V), (1, 0, 2))  # (B, 3, V)
    mean = ml[:, :C]
    log_std = ml[:, C:]
    return recon, mean, log_std


# ----------------------------------------------------------------------------- reference


def vae_ref(x, eps, params, code_length):
    def enc(h):
        for w, b in params["enc"]:
            h = jnp.maximum(h @ w + b, 0.0)
        return h

    codes = [enc(x[:, c, :]) for c in range(3)]
    code_all = jnp.concatenate(codes, axis=-1)
    wm, bm = params["tomean"]
    ws, bs = params["tosigma"]
    mean = code_all @ wm + bm
    log_std = code_all @ ws + bs
    z = mean + eps * jnp.exp(log_std)
    wda, bda = params["dec_all"]
    d_all = jnp.maximum(z @ wda + bda, 0.0)

    def dec(h):
        n = len(params["dec"])
        for i, (w, b) in enumerate(params["dec"]):
            h = h @ w + b
            if i < n - 1:
                h = jnp.maximum(h, 0.0)
        return h

    outs = [dec(d_all[:, c * code_length:(c + 1) * code_length]) for c in range(3)]
    return jnp.stack(outs, axis=1), mean, log_std


# ----------------------------------------------------------------------------- main


if __name__ == "__main__":
    vect_length, num_layer, code_length = 64, 3, 8
    B = 2

    key = jax.random.PRNGKey(0)
    k_params, k_x, k_eps = jax.random.split(key, 3)

    params, enc_out = init_vae_params(k_params, vect_length, num_layer, code_length)
    x = jax.random.normal(k_x, (B, 3, vect_length), dtype=jnp.float32)
    # torch.randn_like(log_sigma) is modeled as an explicit deterministic eps input.
    eps = jax.random.normal(k_eps, (B, code_length), dtype=jnp.float32)

    recon, mean, log_std = vae_forward(x, eps, params, code_length, enc_out)
    jax.block_until_ready((recon, mean, log_std))

    r_ref, m_ref, l_ref = vae_ref(x, eps, params, code_length)
    assert recon.shape == (B, 3, vect_length) and mean.shape == (B, code_length)
    assert jnp.allclose(recon, r_ref, atol=1e-4, rtol=1e-4)
    assert jnp.allclose(mean, m_ref, atol=1e-4, rtol=1e-4)
    assert jnp.allclose(log_std, l_ref, atol=1e-4, rtol=1e-4)

    print("KERNEL_OK")
</pallas_src>

<mosaic_0001>
module attributes {stable_mosaic.version = 11 : i64} {
  func.func @kernel(%arg0: memref<6x64xf32, #tpu.memory_space<vmem>>, %arg1: memref<2x8xf32, #tpu.memory_space<vmem>>, %arg2: memref<64x32xf32, #tpu.memory_space<vmem>>, %arg3: memref<1x32xf32, #tpu.memory_space<vmem>>, %arg4: memref<32x16xf32, #tpu.memory_space<vmem>>, %arg5: memref<1x16xf32, #tpu.memory_space<vmem>>, %arg6: memref<3x16x16xf32, #tpu.memory_space<vmem>>, %arg7: memref<1x16xf32, #tpu.memory_space<vmem>>, %arg8: memref<3x8x8xf32, #tpu.memory_space<vmem>>, %arg9: memref<3x1x8xf32, #tpu.memory_space<vmem>>, %arg10: memref<8x16xf32, #tpu.memory_space<vmem>>, %arg11: memref<1x16xf32, #tpu.memory_space<vmem>>, %arg12: memref<16x32xf32, #tpu.memory_space<vmem>>, %arg13: memref<1x32xf32, #tpu.memory_space<vmem>>, %arg14: memref<32x64xf32, #tpu.memory_space<vmem>>, %arg15: memref<1x64xf32, #tpu.memory_space<vmem>>, %arg16: memref<6x64xf32, #tpu.memory_space<vmem>>, %arg17: memref<2x16xf32, #tpu.memory_space<vmem>>) attributes {dimension_semantics = [], scalar_prefetch = 0 : i64, scratch_operands = 0 : i64, tpu.core_type = #tpu.core_type<tc>} {
    %c0 = arith.constant 0 : index
    %c0_0 = arith.constant 0 : index
    %0 = vector.load %arg0[%c0, %c0_0] : memref<6x64xf32, #tpu.memory_space<vmem>>, vector<6x64xf32>
    %c0_1 = arith.constant 0 : index
    %c0_2 = arith.constant 0 : index
    %1 = vector.load %arg2[%c0_1, %c0_2] : memref<64x32xf32, #tpu.memory_space<vmem>>, vector<64x32xf32>
    %cst = arith.constant dense<0.000000e+00> : vector<6x32xf32>
    %2 = tpu.matmul %0, %1, %cst {dimension_numbers = #tpu.dot_dimension_numbers<[1], [0], [0], [1], [0, 0, 1, 1], [], []>} : vector<6x64xf32>, vector<64x32xf32>, vector<6x32xf32> -> vector<6x32xf32>
    %c0_3 = arith.constant 0 : index
    %c0_4 = arith.constant 0 : index
    %3 = vector.load %arg3[%c0_3, %c0_4] : memref<1x32xf32, #tpu.memory_space<vmem>>, vector<1x32xf32>
    %4 = vector.broadcast %3 : vector<1x32xf32> to vector<6x32xf32>
    %5 = arith.addf %2, %4 : vector<6x32xf32>
    %cst_5 = arith.constant 0.000000e+00 : f32
    %6 = vector.broadcast %cst_5 : f32 to vector<6x32xf32>
    %7 = arith.maximumf %5, %6 : vector<6x32xf32>
    %c0_6 = arith.constant 0 : index
    %c0_7 = arith.constant 0 : index
    %8 = vector.load %arg4[%c0_6, %c0_7] : memref<32x16xf32, #tpu.memory_space<vmem>>, vector<32x16xf32>
    %cst_8 = arith.constant dense<0.000000e+00> : vector<6x16xf32>
    %9 = tpu.matmul %7, %8, %cst_8 {dimension_numbers = #tpu.dot_dimension_numbers<[1], [0], [0], [1], [0, 0, 1, 1], [], []>} : vector<6x32xf32>, vector<32x16xf32>, vector<6x16xf32> -> vector<6x16xf32>
    %c0_9 = arith.constant 0 : index
    %c0_10 = arith.constant 0 : index
    %10 = vector.load %arg5[%c0_9, %c0_10] : memref<1x16xf32, #tpu.memory_space<vmem>>, vector<1x16xf32>
    %11 = vector.broadcast %10 : vector<1x16xf32> to vector<6x16xf32>
    %12 = arith.addf %9, %11 : vector<6x16xf32>
    %cst_11 = arith.constant 0.000000e+00 : f32
    %13 = vector.broadcast %cst_11 : f32 to vector<6x16xf32>
    %14 = arith.maximumf %12, %13 : vector<6x16xf32>
    %c0_12 = arith.constant 0 : index
    %c0_13 = arith.constant 0 : index
    %15 = vector.load %arg7[%c0_12, %c0_13] : memref<1x16xf32, #tpu.memory_space<vmem>>, vector<1x16xf32>
    %16 = vector.extract_strided_slice %14 {offsets = [0, 0], sizes = [2, 16], strides = [1, 1]} : vector<6x16xf32> to vector<2x16xf32>
    %c0_14 = arith.constant 0 : index
    %c0_15 = arith.constant 0 : index
    %c0_16 = arith.constant 0 : index
    %17 = vector.load %arg6[%c0_14, %c0_15, %c0_16] : memref<3x16x16xf32, #tpu.memory_space<vmem>>, vector<1x16x16xf32>
    %18 = vector.shape_cast %17 : vector<1x16x16xf32> to vector<16x16xf32>
    %cst_17 = arith.constant dense<0.000000e+00> : vector<2x16xf32>
    %19 = tpu.matmul %16, %18, %cst_17 {dimension_numbers = #tpu.dot_dimension_numbers<[1], [0], [0], [1], [0, 0, 1, 1], [], []>} : vector<2x16xf32>, vector<16x16xf32>, vector<2x16xf32> -> vector<2x16xf32>
    %20 = vector.broadcast %15 : vector<1x16xf32> to vector<2x16xf32>
    %21 = arith.addf %20, %19 : vector<2x16xf32>
    %22 = vector.extract_strided_slice %14 {offsets = [2, 0], sizes = [2, 16], strides = [1, 1]} : vector<6x16xf32> to vector<2x16xf32>
    %c1 = arith.constant 1 : index
    %c0_18 = arith.constant 0 : index
    %c0_19 = arith.constant 0 : index
    %23 = vector.load %arg6[%c1, %c0_18, %c0_19] : memref<3x16x16xf32, #tpu.memory_space<vmem>>, vector<1x16x16xf32>
    %24 = vector.shape_cast %23 : vector<1x16x16xf32> to vector<16x16xf32>
    %cst_20 = arith.constant dense<0.000000e+00> : vector<2x16xf32>
    %25 = tpu.matmul %22, %24, %cst_20 {dimension_numbers = #tpu.dot_dimension_numbers<[1], [0], [0], [1], [0, 0, 1, 1], [], []>} : vector<2x16xf32>, vector<16x16xf32>, vector<2x16xf32> -> vector<2x16xf32>
    %26 = arith.addf %21, %25 : vector<2x16xf32>
    %27 = vector.extract_strided_slice %14 {offsets = [4, 0], sizes = [2, 16], strides = [1, 1]} : vector<6x16xf32> to vector<2x16xf32>
    %c2 = arith.constant 2 : index
    %c0_21 = arith.constant 0 : index
    %c0_22 = arith.constant 0 : index
    %28 = vector.load %arg6[%c2, %c0_21, %c0_22] : memref<3x16x16xf32, #tpu.memory_space<vmem>>, vector<1x16x16xf32>
    %29 = vector.shape_cast %28 : vector<1x16x16xf32> to vector<16x16xf32>
    %cst_23 = arith.constant dense<0.000000e+00> : vector<2x16xf32>
    %30 = tpu.matmul %27, %29, %cst_23 {dimension_numbers = #tpu.dot_dimension_numbers<[1], [0], [0], [1], [0, 0, 1, 1], [], []>} : vector<2x16xf32>, vector<16x16xf32>, vector<2x16xf32> -> vector<2x16xf32>
    %31 = arith.addf %26, %30 : vector<2x16xf32>
    %32 = vector.extract_strided_slice %31 {offsets = [0, 0], sizes = [2, 8], strides = [1, 1]} : vector<2x16xf32> to vector<2x8xf32>
    %33 = vector.extract_strided_slice %31 {offsets = [0, 8], sizes = [2, 8], strides = [1, 1]} : vector<2x16xf32> to vector<2x8xf32>
    %c0_24 = arith.constant 0 : index
    %c0_25 = arith.constant 0 : index
    %34 = vector.load %arg1[%c0_24, %c0_25] : memref<2x8xf32, #tpu.memory_space<vmem>>, vector<2x8xf32>
    %35 = math.exp %33 : vector<2x8xf32>
    %36 = arith.mulf %34, %35 : vector<2x8xf32>
    %37 = arith.addf %32, %36 : vector<2x8xf32>
    %c0_26 = arith.constant 0 : index
    %c0_27 = arith.constant 0 : index
    %c0_28 = arith.constant 0 : index
    %38 = vector.load %arg8[%c0_26, %c0_27, %c0_28] : memref<3x8x8xf32, #tpu.memory_space<vmem>>, vector<1x8x8xf32>
    %39 = vector.shape_cast %38 : vector<1x8x8xf32> to vector<8x8xf32>
    %cst_29 = arith.constant dense<0.000000e+00> : vector<2x8xf32>
    %40 = tpu.matmul %37, %39, %cst_29 {dimension_numbers = #tpu.dot_dimension_numbers<[1], [0], [0], [1], [0, 0, 1, 1], [], []>} : vector<2x8xf32>, vector<8x8xf32>, vector<2x8xf32> -> vector<2x8xf32>
    %c0_30 = arith.constant 0 : index
    %c0_31 = arith.constant 0 : index
    %c0_32 = arith.constant 0 : index
    %41 = vector.load %arg9[%c0_30, %c0_31, %c0_32] : memref<3x1x8xf32, #tpu.memory_space<vmem>>, vector<1x1x8xf32>
    %42 = vector.shape_cast %41 : vector<1x1x8xf32> to vector<1x8xf32>
    %43 = vector.broadcast %42 : vector<1x8xf32> to vector<2x8xf32>
    %44 = arith.addf %40, %43 : vector<2x8xf32>
    %cst_33 = arith.constant 0.000000e+00 : f32
    %45 = vector.broadcast %cst_33 : f32 to vector<2x8xf32>
    %46 = arith.maximumf %44, %45 : vector<2x8xf32>
    %c1_34 = arith.constant 1 : index
    %c0_35 = arith.constant 0 : index
    %c0_36 = arith.constant 0 : index
    %47 = vector.load %arg8[%c1_34, %c0_35, %c0_36] : memref<3x8x8xf32, #tpu.memory_space<vmem>>, vector<1x8x8xf32>
    %48 = vector.shape_cast %47 : vector<1x8x8xf32> to vector<8x8xf32>
    %cst_37 = arith.constant dense<0.000000e+00> : vector<2x8xf32>
    %49 = tpu.matmul %37, %48, %cst_37 {dimension_numbers = #tpu.dot_dimension_numbers<[1], [0], [0], [1], [0, 0, 1, 1], [], []>} : vector<2x8xf32>, vector<8x8xf32>, vector<2x8xf32> -> vector<2x8xf32>
    %c1_38 = arith.constant 1 : index
    %c0_39 = arith.constant 0 : index
    %c0_40 = arith.constant 0 : index
    %50 = vector.load %arg9[%c1_38, %c0_39, %c0_40] : memref<3x1x8xf32, #tpu.memory_space<vmem>>, vector<1x1x8xf32>
    %51 = vector.shape_cast %50 : vector<1x1x8xf32> to vector<1x8xf32>
    %52 = vector.broadcast %51 : vector<1x8xf32> to vector<2x8xf32>
    %53 = arith.addf %49, %52 : vector<2x8xf32>
    %cst_41 = arith.constant 0.000000e+00 : f32
    %54 = vector.broadcast %cst_41 : f32 to vector<2x8xf32>
    %55 = arith.maximumf %53, %54 : vector<2x8xf32>
    %c2_42 = arith.constant 2 : index
    %c0_43 = arith.constant 0 : index
    %c0_44 = arith.constant 0 : index
    %56 = vector.load %arg8[%c2_42, %c0_43, %c0_44] : memref<3x8x8xf32, #tpu.memory_space<vmem>>, vector<1x8x8xf32>
    %57 = vector.shape_cast %56 : vector<1x8x8xf32> to vector<8x8xf32>
    %cst_45 = arith.constant dense<0.000000e+00> : vector<2x8xf32>
    %58 = tpu.matmul %37, %57, %cst_45 {dimension_numbers = #tpu.dot_dimension_numbers<[1], [0], [0], [1], [0, 0, 1, 1], [], []>} : vector<2x8xf32>, vector<8x8xf32>, vector<2x8xf32> -> vector<2x8xf32>
    %c2_46 = arith.constant 2 : index
    %c0_47 = arith.constant 0 : index
    %c0_48 = arith.constant 0 : index
    %59 = vector.load %arg9[%c2_46, %c0_47, %c0_48] : memref<3x1x8xf32, #tpu.memory_space<vmem>>, vector<1x1x8xf32>
    %60 = vector.shape_cast %59 : vector<1x1x8xf32> to vector<1x8xf32>
    %61 = vector.broadcast %60 : vector<1x8xf32> to vector<2x8xf32>
    %62 = arith.addf %58, %61 : vector<2x8xf32>
    %cst_49 = arith.constant 0.000000e+00 : f32
    %63 = vector.broadcast %cst_49 : f32 to vector<2x8xf32>
    %64 = arith.maximumf %62, %63 : vector<2x8xf32>
    %65 = tpu.concatenate %46, %55, %64 in 0 : vector<2x8xf32>, vector<2x8xf32>, vector<2x8xf32> -> vector<6x8xf32>
    %c0_50 = arith.constant 0 : index
    %c0_51 = arith.constant 0 : index
    %66 = vector.load %arg10[%c0_50, %c0_51] : memref<8x16xf32, #tpu.memory_space<vmem>>, vector<8x16xf32>
    %cst_52 = arith.constant dense<0.000000e+00> : vector<6x16xf32>
    %67 = tpu.matmul %65, %66, %cst_52 {dimension_numbers = #tpu.dot_dimension_numbers<[1], [0], [0], [1], [0, 0, 1, 1], [], []>} : vector<6x8xf32>, vector<8x16xf32>, vector<6x16xf32> -> vector<6x16xf32>
    %c0_53 = arith.constant 0 : index
    %c0_54 = arith.constant 0 : index
    %68 = vector.load %arg11[%c0_53, %c0_54] : memref<1x16xf32, #tpu.memory_space<vmem>>, vector<1x16xf32>
    %69 = vector.broadcast %68 : vector<1x16xf32> to vector<6x16xf32>
    %70 = arith.addf %67, %69 : vector<6x16xf32>
    %cst_55 = arith.constant 0.000000e+00 : f32
    %71 = vector.broadcast %cst_55 : f32 to vector<6x16xf32>
    %72 = arith.maximumf %70, %71 : vector<6x16xf32>
    %c0_56 = arith.constant 0 : index
    %c0_57 = arith.constant 0 : index
    %73 = vector.load %arg12[%c0_56, %c0_57] : memref<16x32xf32, #tpu.memory_space<vmem>>, vector<16x32xf32>
    %cst_58 = arith.constant dense<0.000000e+00> : vector<6x32xf32>
    %74 = tpu.matmul %72, %73, %cst_58 {dimension_numbers = #tpu.dot_dimension_numbers<[1], [0], [0], [1], [0, 0, 1, 1], [], []>} : vector<6x16xf32>, vector<16x32xf32>, vector<6x32xf32> -> vector<6x32xf32>
    %c0_59 = arith.constant 0 : index
    %c0_60 = arith.constant 0 : index
    %75 = vector.load %arg13[%c0_59, %c0_60] : memref<1x32xf32, #tpu.memory_space<vmem>>, vector<1x32xf32>
    %76 = vector.broadcast %75 : vector<1x32xf32> to vector<6x32xf32>
    %77 = arith.addf %74, %76 : vector<6x32xf32>
    %cst_61 = arith.constant 0.000000e+00 : f32
    %78 = vector.broadcast %cst_61 : f32 to vector<6x32xf32>
    %79 = arith.maximumf %77, %78 : vector<6x32xf32>
    %c0_62 = arith.constant 0 : index
    %c0_63 = arith.constant 0 : index
    %80 = vector.load %arg14[%c0_62, %c0_63] : memref<32x64xf32, #tpu.memory_space<vmem>>, vector<32x64xf32>
    %cst_64 = arith.constant dense<0.000000e+00> : vector<6x64xf32>
    %81 = tpu.matmul %79, %80, %cst_64 {dimension_numbers = #tpu.dot_dimension_numbers<[1], [0], [0], [1], [0, 0, 1, 1], [], []>} : vector<6x32xf32>, vector<32x64xf32>, vector<6x64xf32> -> vector<6x64xf32>
    %c0_65 = arith.constant 0 : index
    %c0_66 = arith.constant 0 : index
    %82 = vector.load %arg15[%c0_65, %c0_66] : memref<1x64xf32, #tpu.memory_space<vmem>>, vector<1x64xf32>
    %83 = vector.broadcast %82 : vector<1x64xf32> to vector<6x64xf32>
    %84 = arith.addf %81, %83 : vector<6x64xf32>
    %c0_67 = arith.constant 0 : index
    %c0_68 = arith.constant 0 : index
    %85 = vector.load %arg16[%c0_67, %c0_68] : memref<6x64xf32, #tpu.memory_space<vmem>>, vector<6x64xf32>
    tpu.vector_store %arg16[%c0_67, %c0_68], %84 {strides = array<i32>} : memref<6x64xf32, #tpu.memory_space<vmem>>, vector<6x64xf32>,
    %c0_69 = arith.constant 0 : index
    %c0_70 = arith.constant 0 : index
    %86 = vector.load %arg17[%c0_69, %c0_70] : memref<2x16xf32, #tpu.memory_space<vmem>>, vector<2x16xf32>
    tpu.vector_store %arg17[%c0_69, %c0_70], %31 {strides = array<i32>} : memref<2x16xf32, #tpu.memory_space<vmem>>, vector<2x16xf32>,
    return
  }
}

</mosaic_0001>

<bundles_post_ra>
// kernel: vae_forward.1
= control target key start
LH: loop header
LB: loop body
LE: loop exit
PB: predicated region body
PF: predicated region fallthrough
CT: control target
= control target key end

     0   :  { %v1198_v0 = vmov 0.0|0.0   ;;  %vm1199_vm0 = vmmov 0   ;;  %v1200_v4 = vmov 0.0   ;;  %vm71_vm1 = vcmask 523264   ;;  %s1463_s2 = inlined_call_operand.vmem [shape: f32[64,32], index: 2, kind: input, shape index: {}]   ;;  %s1464_s4 = inlined_call_operand.vmem [shape: f32[32,16], index: 4, kind: input, shape index: {}]   ;;  %s1465_s0 = inlined_call_operand.vmem [shape: f32[6,64], index: 0, kind: input, shape index: {}]   ;;  %s1466_s3 = inlined_call_operand.vmem [shape: f32[1,32], index: 3, kind: input, shape index: {}]   ;;  %s1467_s6 = inlined_call_operand.vmem [shape: f32[3,16,16], index: 6, kind: input, shape index: {}]   ;;  %s1468_s5 = inlined_call_operand.vmem [shape: f32[1,16], index: 5, kind: input, shape index: {}]   ;;  %s1469_s7 = inlined_call_operand.vmem [shape: f32[1,16], index: 7, kind: input, shape index: {}]   ;;  %s1470_s17 = inlined_call_operand.vmem [shape: f32[2,16], index: 17, kind: output, shape index: {1}]   ;;  %s1471_s8 = inlined_call_operand.vmem [shape: f32[3,8,8], index: 8, kind: input, shape index: {}]   ;;  %s1472_s1 = inlined_call_operand.vmem [shape: f32[2,8], index: 1, kind: input, shape index: {}]   ;;  %s1473_s10 = inlined_call_operand.vmem [shape: f32[8,16], index: 10, kind: input, shape index: {}]   ;;  %s1474_s9 = inlined_call_operand.vmem [shape: f32[3,1,8], index: 9, kind: input, shape index: {}]   ;;  %s1475_s12 = inlined_call_operand.vmem [shape: f32[16,32], index: 12, kind: input, shape index: {}]   ;;  %s1476_s14 = inlined_call_operand.vmem [shape: f32[32,64], index: 14, kind: input, shape index: {}]   ;;  %s1477_s11 = inlined_call_operand.vmem [shape: f32[1,16], index: 11, kind: input, shape index: {}]   ;;  %s1478_s13 = inlined_call_operand.vmem [shape: f32[1,32], index: 13, kind: input, shape index: {}]   ;;  %s1479_s15 = inlined_call_operand.vmem [shape: f32[1,64], index: 15, kind: input, shape index: {}]   ;;  %s1480_s16 = inlined_call_operand.vmem [shape: f32[6,64], index: 16, kind: output, shape index: {0}]  }
   0x1   :  { %1483 = sst [smem:[#allocation2_spill]] %s1463_s2  ;;  %1151 = vmatprep.subr.bf16.mxu0 %v1198_v0  ;;  %1078 = vmatprep.mubr.msk.f32.mxu0 %vm1199_vm0, %v1200_v4  ;;  %v55_v17 = vld [vmem:[%s1465_s0] sm:$0x3f]  ;;  %vm157_vm2 = vcmask 261120   ;;  %v234_v27 = vld [vmem:[%s1467_s6 + $0x8] sm:$0xff]  ;;  %v1001_v30 = vld [vmem:[%s1467_s6 + $0x10] sm:$0xff] }
   0x2   :  { %1484 = sst [smem:[#allocation3_spill]] %s1464_s4  ;;  %s1485_s26 = sld [smem:[#allocation2_spill]]  ;;  %1163 = vmatprep.subr.bf16.mxu1 %v1198_v0  ;;  %1089 = vmatprep.mubr.msk.f32.mxu1 %vm1199_vm0, %v1200_v4  ;;  %v995_v21 = vld [vmem:[%s1466_s3] ss:$0 sm:$0xff]  ;;  %v1002_v31 = vld [vmem:[%s1467_s6 + $0x18] sm:$0xff]  ;;  %vm235_vm3 = vcmask 130048  }
   0x3   :  { %s1486_s20 = sld [smem:[#allocation3_spill]]  ;;  %v233_v26 = vld [vmem:[%s1467_s6] sm:$0xff]  ;;  %v1173_v35 = vpack.c.bf16 %v1002_v31, %v1001_v30  ;;  %v1005_v38 = vld [vmem:[%s1467_s6 + $0x28] sm:$0xff]  ;;  %vm985_vm4 = vcmask 123904   ;;  %vm487_vm5 = vcmask 64512   ;;  %v1013_v54 = vld [vmem:[%s1471_s8 + $0x10] sm:$0xff] }
   0x4   :  { %v1170_v28 = vpack.c.bf16 %v234_v27, %v233_v26  ;;  %v997_v29 = vld [vmem:[%s1468_s5] ss:$0 sm:$0xff]  ;;  %v1009_v48 = vld [vmem:[%s1471_s8 + $0x8] sm:$0xff]  ;;  %v1011_v57 = vld [vmem:[%s1474_s9 + $0x1] ss:$0 sm:$0xff]  ;;  %vm730_vm6 = vcmask 1041408  }
   0x5   :  { %v1004_v37 = vld [vmem:[%s1467_s6 + $0x20] sm:$0xff]  ;;  %vm732_vm7 = vcmask 1043456   ;;  %vm983_vm8 = vcmask 521216  }
   0x6   :  { %v1176_v39 = vpack.c.bf16 %v1005_v38, %v1004_v37  ;;  %v1000_v42 = vld [vmem:[%s1469_s7] ss:$0 sm:$0xff]  ;;  %s1201_s7 = smov 120  }
   0x7   :  { %v479_v47 = vld [vmem:[%s1471_s8] sm:$0xff] }
   0x8   :  { %v56_v1 = vld [vmem:[%s1485_s26] sm:$0xff]  ;;  %v57_v2 = vld [vmem:[%s1485_s26 + $0x8] sm:$0xff]  ;;  %v58_v3 = vld [vmem:[%s1485_s26 + $0x10] sm:$0xff] }
   0x9   :  { %v1152_v5 = vpack.c.bf16 %v57_v2, %v56_v1  ;;  %v59_v6 = vld [vmem:[%s1485_s26 + $0x18] sm:$0xff]  ;;  %v146_v8 = vld [vmem:[%s1486_s20] sm:$0xff]  ;;  %v147_v9 = vld [vmem:[%s1486_s20 + $0x8] sm:$0xff] }
   0xa   :  { %v1155_v7 = vpack.c.bf16 %v59_v6, %v58_v3  ;;  %v60_v10 = vld [vmem:[%s1485_s26 + $0x20] sm:$0xff]  ;;  %v61_v11 = vld [vmem:[%s1485_s26 + $0x28] sm:$0xff]  ;;  %v1164_v12 = vpack.c.bf16 %v147_v9, %v146_v8  ;;  %v62_v14 = vld [vmem:[%s1485_s26 + $0x30] sm:$0xff] }
   0xb   :  { %1153 = vmatpush3.bf16.msra.mxu0 %v1152_v5  ;;  %v1158_v13 = vpack.c.bf16 %v61_v11, %v60_v10  ;;  %v63_v15 = vld [vmem:[%s1485_s26 + $0x38] sm:$0xff]  ;;  %v148_v18 = vld [vmem:[%s1486_s20 + $0x10] sm:$0xff]  ;;  %v470_v50 = vld [vmem:[%s1472_s1] sm:$0x3] }
   0xc   :  { %1154 = vmatprep.subr.bf16.mxu0 %v1198_v0  ;;  %1165 = vmatpush3.bf16.msra.mxu1 %v1164_v12  ;;  %v1161_v16 = vpack.c.bf16 %v63_v15, %v62_v14  ;;  %v149_v19 = vld [vmem:[%s1486_s20 + $0x18] sm:$0xff]  ;;  %v734_v55 = vld [vmem:[%s1473_s10] sm:$0xff]  ;;  %v817_v14 = vld [vmem:[%s1475_s12 + $0x8] sm:$0xff] }
   0xd   :  { %1166 = vmatprep.subr.bf16.mxu1 %v1198_v0  ;;  %v1167_v20 = vpack.c.bf16 %v149_v19, %v148_v18  ;;  %v1007_v56 = vld [vmem:[%s1474_s9] ss:$0 sm:$0xff]  ;;  %v1015_v1 = vld [vmem:[%s1474_s9 + $0x2] ss:$0 sm:$0xff] }
   0xe   :  { %v1021_v30 = vld [vmem:[%s1479_s15] ss:$0 sm:$0xff] }
   0xf   :  { %1156 = vmatpush3.bf16.msra.mxu0 %v1155_v7 }
  0x10   :  { %1157 = vmatprep.subr.bf16.mxu0 %v1198_v0  ;;  %1168 = vmatpush3.bf16.msra.mxu1 %v1167_v20 }
  0x11   :  { %1169 = vmatprep.subr.bf16.mxu1 %v1198_v0 }
  0x13   :  { %1159 = vmatpush3.bf16.msra.mxu0 %v1158_v13  ;;  %v816_v13 = vld [vmem:[%s1475_s12] sm:$0xff] }
  0x14   :  { %1160 = vmatprep.subr.bf16.mxu0 %v1198_v0  ;;  %v1179_v15 = vpack.c.bf16 %v817_v14, %v816_v13 }
  0x17   :  { %1162 = vmatpush3.bf16.msra.mxu0 %v1161_v16  ;;  %v899_v16 = vld [vmem:[%s1476_s14] sm:$0xff] }
  0x18   :  { %1118 = vmatprep.subr.mxu0 %v1200_v4 }
  0x1a   :  { %1079 = vmatmul.mubr.msk.f32.vlgmr.msra.gmra.mrb[0].mxu0 %vm71_vm1, %v55_v17  ;;  %v900_v17 = vld [vmem:[%s1476_s14 + $0x8] sm:$0xff] }
  0x1b   :  { %1120 = vmatprep.mubr.msk.f32.mxu0 %vm1199_vm0, %v1200_v4  ;;  %1119 = vmatpush3.msra.mxu0 %v1009_v48  ;;  %v1182_v18 = vpack.c.bf16 %v900_v17, %v899_v16 }
  0x1c   :  { %1128 = vmatprep.subr.mxu0 %v1200_v4 }
  0xed   :  { %v141_v22 = vpop.f32.mrb[0].mxu0 }
  0xee   :  { %v142_v23 = vadd.f32 %v995_v21, %v141_v22  ;;  %v1080_v24 = vpop.f32.mrb[1].mxu0 }
  0xef   :  { %v902_v24 = vld [vmem:[%s1476_s14 + $0x18] sm:$0xff] }
  0xf0   :  { %v145_v25 = vmax.f32 %v142_v23, 0.0  ;;  %v901_v23 = vld [vmem:[%s1476_s14 + $0x10] sm:$0xff] }
  0xf2   :  { %1090 = vmatmul.mubr.msk.f32.vlgmr.msra.gmra.mrb[0].mxu1 %vm157_vm2, %v145_v25  ;;  %v1185_v25 = vpack.c.bf16 %v902_v24, %v901_v23 }
  0xf3   :  { %1096 = vmatprep.mubr.msk.f32.mxu1 %vm1199_vm0, %v1200_v4  ;;  %1171 = vmatpush3.bf16.msra.mxu1 %v1170_v28 }
  0xf4   :  { %1172 = vmatprep.subr.bf16.mxu1 %v1198_v0 }
 0x1c5   :  { %v227_v32 = vpop.f32.mrb[0].mxu1 }
 0x1c6   :  { %v228_v33 = vadd.f32 %v997_v29, %v227_v32  ;;  %v1091_v34 = vpop.f32.mrb[1].mxu1 }
 0x1c8   :  { %v231_v36 = vmax.f32 %v228_v33, 0.0 }
 0x1ca   :  { %1097 = vmatmul.mubr.msk.f32.vlgmr.msra.gmra.mrb[2].mxu1 %vm235_vm3, %v231_v36  ;;  %v319_v40 = vrot.slane %v231_v36, 2  ;;  %v396_v41 = vrot.slane %v231_v36, 4 }
 0x1cb   :  { %1174 = vmatpush3.bf16.msra.mxu1 %v1173_v35  ;;  %1103 = vmatprep.mubr.msk.f32.mxu1 %vm1199_vm0, %v1200_v4 }
 0x1cc   :  { %1175 = vmatprep.subr.bf16.mxu1 %v1198_v0 }
 0x1d2   :  { %1104 = vmatmul.mubr.msk.f32.vlgmr.msra.gmra.mrb[2].mxu1 %vm235_vm3, %v319_v40 }
 0x1d3   :  { %1177 = vmatpush3.bf16.msra.mxu1 %v1176_v39  ;;  %1110 = vmatprep.mubr.msk.f32.mxu1 %vm1199_vm0, %v1200_v4 }
 0x1d4   :  { %1113 = vmatprep.subr.mxu1 %v1200_v4 }
 0x1da   :  { %1111 = vmatmul.mubr.msk.f32.vlgmr.msra.gmra.mrb[2].mxu1 %vm235_vm3, %v396_v41 }
 0x1db   :  { %1115 = vmatprep.mubr.msk.f32.mxu1 %vm1199_vm0, %v1200_v4  ;;  %1114 = vmatpush3.msra.mxu1 %v479_v47 }
 0x1dc   :  { %1123 = vmatprep.subr.mxu1 %v1200_v4 }
 0x2ad   :  { %v465_v43 = vpop.f32.mrb[2].mxu1 }
 0x2ae   :  { %v1187_v44 = vadd.f32 %v1000_v42, %v465_v43  ;;  %v1112_v45 = vpop.f32.mrb[3].mxu1 }
 0x2b0   :  { %v471_v46 = vmul.f32 1.442695, %v1187_v44  ;;  %986 = vst.msk [vmem:[%s1470_s17] sm:$0x3] %vm985_vm4, %v1187_v44 }
 0x2b2   :  { %1196 = vpow2.f32 %v471_v46 }
 0x2bc   :  { %v1197_v49 = vpop.eup %1196 }
 0x2bd   :  { %474 = vrot.lane.b32.xlu0 %v1197_v49, %s1201_s7 }
 0x32f   :  { %v475_v51 = vpop.permute.xlu0 %474 }
 0x330   :  { %v477_v52 = vmul.f32 %v475_v51, %v470_v50 }
 0x332   :  { %v478_v53 = vadd.f32 %v1187_v44, %v477_v52 }
 0x334   :  { %1116 = vmatmul.mubr.msk.f32.vlgmr.msra.gmra.mrb[4].mxu1 %vm487_vm5, %v478_v53  ;;  %1121 = vmatmul.mubr.msk.f32.vlgmr.msra.gmra.mrb[2].mxu0 %vm487_vm5, %v478_v53 }
 0x335   :  { %1124 = vmatpush3.msra.mxu1 %v1013_v54  ;;  %1125 = vmatprep.mubr.msk.f32.mxu1 %vm1199_vm0, %v1200_v4 }
 0x336   :  { %1130 = vmatprep.mubr.msk.f32.mxu0 %vm1199_vm0, %v1200_v4  ;;  %1178 = vmatprep.subr.bf16.mxu1 %v1198_v0 }
 0x337   :  { %1129 = vmatpush3.msra.mxu0 %v734_v55 }
 0x338   :  { %1126 = vmatmul.mubr.msk.f32.vlgmr.msra.gmra.mrb[6].mxu1 %vm487_vm5, %v478_v53  ;;  %1181 = vmatprep.subr.bf16.mxu0 %v1198_v0 }
 0x339   :  { %1137 = vmatprep.mubr.msk.f32.mxu1 %vm1199_vm0, %v1200_v4  ;;  %1180 = vmatpush3.bf16.msra.mxu1 %v1179_v15 }
 0x407   :  { %v557_v58 = vpop.f32.mrb[4].mxu1  ;;  %v638_v59 = vpop.f32.mrb[2].mxu0 }
 0x408   :  { %v558_v60 = vadd.f32 %v1007_v56, %v557_v58  ;;  %v639_v61 = vadd.f32 %v1011_v57, %v638_v59  ;;  %v1117_v62 = vpop.f32.mrb[5].mxu1  ;;  %v1122_v63 = vpop.f32.mrb[3].mxu0 }
 0x40a   :  { %v642_v2 = vmax.f32 %v639_v61, 0.0  ;;  %v561_v5 = vmax.f32 %v558_v60, 0.0 }
 0x40b   :  { %v719_v3 = vpop.f32.mrb[6].mxu1 }
 0x40c   :  { %v725_v6 = vrot.slane %v642_v2, 6  ;;  %v720_v7 = vadd.f32 %v1015_v1, %v719_v3  ;;  %v1127_v8 = vpop.f32.mrb[7].mxu1 }
 0x40e   :  { %v731_v9 = vsel %vm730_vm6, %v561_v5, %v725_v6  ;;  %v723_v10 = vmax.f32 %v720_v7, 0.0 }
 0x410   :  { %v728_v11 = vrot.slane %v723_v10, 4 }
 0x412   :  { %v733_v12 = vsel %vm732_vm7, %v731_v9, %v728_v11 }
 0x413   :  { %1131 = vmatmul.mubr.msk.f32.vlgmr.msra.gmra.mrb[4].mxu0 %vm487_vm5, %v733_v12 }
 0x414   :  { %1148 = vmatprep.mubr.msk.f32.mxu0 %vm1199_vm0, %v1200_v4  ;;  %1183 = vmatpush3.bf16.msra.mxu0 %v1182_v18  ;;  %v1017_v4 = vld [vmem:[%s1477_s11] ss:$0 sm:$0xff] }
 0x415   :  { %1184 = vmatprep.subr.bf16.mxu0 %v1198_v0  ;;  %v1019_v0 = vld [vmem:[%s1478_s13] ss:$0 sm:$0xff] }
 0x418   :  { %1186 = vmatpush3.bf16.msra.mxu0 %v1185_v25 }
 0x4e6   :  { %v811_v19 = vpop.f32.mrb[4].mxu0 }
 0x4e7   :  { %v812_v20 = vadd.f32 %v1017_v4, %v811_v19  ;;  %v1132_v21 = vpop.f32.mrb[5].mxu0 }
 0x4e9   :  { %v815_v22 = vmax.f32 %v812_v20, 0.0 }
 0x4eb   :  { %1138 = vmatmul.mubr.msk.f32.vlgmr.msra.gmra.mrb[8].mxu1 %vm235_vm3, %v815_v22 }
 0x5be   :  { %v894_v26 = vpop.f32.mrb[8].mxu1 }
 0x5bf   :  { %v895_v27 = vadd.f32 %v1019_v0, %v894_v26  ;;  %v1139_v28 = vpop.f32.mrb[9].mxu1 }
 0x5c1   :  { %v898_v29 = vmax.f32 %v895_v27, 0.0 }
 0x5c3   :  { %1149 = vmatmul.mubr.msk.f32.vlgmr.msra.gmra.mrb[6].mxu0 %vm157_vm2, %v898_v29 }
 0x696   :  { %v979_v31 = vpop.f32.mrb[6].mxu0 }
 0x697   :  { %v980_v32 = vadd.f32 %v1021_v30, %v979_v31  ;;  %v1150_v33 = vpop.f32.mrb[7].mxu0 }
 0x699   :  { %984 = vst.msk [vmem:[%s1480_s16] sm:$0x3f] %vm983_vm8, %v980_v32 }

</bundles_post_ra>
